<compile_context>
chip_gen: v7x
topology: tpu7x:2x2x1
jax: 0.10.0
libtpu: 0.0.40
codegen_flags: <defaults>
</compile_context>

<pallas_src>
import functools
import math

import jax
import jax.numpy as jnp
from jax import lax
from jax.experimental import pallas as pl
from jax.experimental.pallas import tpu as pltpu

_TARGET_BLOCK_BYTES = 8 * 1024 * 1024    # ~8 MiB per x block
_VMEM_LIMIT_BYTES = 48 * 1024 * 1024     # safe on v5e/v6e/v7x
_MAX_TILE_ROWS = 2048
_MAX_TILE_COLS = 32768


def _ln_rows_kernel(x_ref, wb_ref, o_ref, *, eps: float, inv_denom: float):
    """Wide-hidden path: rows on sublanes, hidden (normalized axis) on lanes."""
    x = x_ref[...].astype(jnp.float32)                    # (TR, H)
    wb = wb_ref[...].astype(jnp.float32)                  # (2, H): [weight; bias]
    mu = jnp.mean(x, axis=-1, keepdims=True)              # (TR, 1)
    diff = x - mu
    var = jnp.sum(diff * diff, axis=-1, keepdims=True) * inv_denom  # unbiased (N-1)
    # inv = 1 / max(sqrt(var), eps) == min(rsqrt(var), 1/eps); rsqrt(0)=inf is
    # clamped, so padded/constant rows stay finite.
    inv = jnp.minimum(lax.rsqrt(var), 1.0 / eps)          # (TR, 1), EUP
    out = diff * inv * wb[0:1, :] + wb[1:2, :]
    o_ref[...] = out.astype(o_ref.dtype)


def _ln_cols_kernel(x_ref, wb_ref, o_ref, *, eps: float, inv_denom: float):
    """Narrow-hidden path: hidden on sublanes, rows on lanes (lane-dense I/O)."""
    x = x_ref[...].astype(jnp.float32)                    # (H, TC)
    wb = wb_ref[...].astype(jnp.float32)                  # (H, 2): [:,0]=w, [:,1]=b
    mu = jnp.mean(x, axis=0, keepdims=True)               # (1, TC)
    diff = x - mu
    var = jnp.sum(diff * diff, axis=0, keepdims=True) * inv_denom
    inv = jnp.minimum(lax.rsqrt(var), 1.0 / eps)          # (1, TC)
    out = diff * inv * wb[:, 0:1] + wb[:, 1:2]
    o_ref[...] = out.astype(o_ref.dtype)


def _compiler_params():
    return pltpu.CompilerParams(
        dimension_semantics=("parallel",),
        vmem_limit_bytes=_VMEM_LIMIT_BYTES,
    )


def layer_norm(x, weight, bias, eps=1e-6):
    """LayerNorm over the last axis, matching the PyTorch module exactly:
    mu = mean, sigma = unbiased std clamped at eps, out = (x-mu)/sigma * w + b."""
    orig_shape = x.shape
    hidden = int(orig_shape[-1])
    rows = int(math.prod(orig_shape[:-1]))
    # torch.std uses the unbiased estimator (divide by N-1).
    # TODO(synk): hidden == 1 yields NaN in torch (std of one element); we avoid
    # the div-by-zero instead of reproducing the NaN.
    inv_denom = 1.0 / float(hidden - 1) if hidden > 1 else 1.0
    itemsize = jnp.dtype(x.dtype).itemsize

    x2 = x.reshape(rows, hidden)
    wb = jnp.stack([weight.reshape(hidden), bias.reshape(hidden)], axis=0)  # (2, H)

    if hidden >= 128:
        # hidden already lane-dense: tile rows, normalize over lanes.
        tr = _TARGET_BLOCK_BYTES // max(1, hidden * itemsize)
        tr = int(min(tr, _MAX_TILE_ROWS, rows))
        if tr >= 8:
            tr = (tr // 8) * 8          # sublane-aligned tile
        else:
            tr = rows                   # tiny row count: single full block
        kernel = functools.partial(_ln_rows_kernel, eps=eps, inv_denom=inv_denom)
        out2 = pl.pallas_call(
            kernel,
            out_shape=jax.ShapeDtypeStruct((rows, hidden), x.dtype),
            grid_spec=pltpu.PrefetchScalarGridSpec(
                num_scalar_prefetch=0,
                grid=(pl.cdiv(rows, tr),),
                in_specs=[
                    pl.BlockSpec((tr, hidden), lambda i: (i, 0)),
                    pl.BlockSpec((2, hidden), lambda i: (0, 0)),   # fetched once
                ],
                out_specs=pl.BlockSpec((tr, hidden), lambda i: (i, 0)),
            ),
            compiler_params=_compiler_params(),
        )(x2, wb)
        return out2.reshape(orig_shape)

    # hidden < 128: present a lane-dense slab (hidden on sublanes, rows on lanes)
    # so vector stores are unmasked full-lane stores.
    x2t = x2.T                          # (H, rows)   layout plumbing in the wrapper
    wbt = wb.T                          # (H, 2)
    tc = _TARGET_BLOCK_BYTES // max(1, hidden * itemsize)
    tc = int(min(tc, _MAX_TILE_COLS, rows))
    if tc >= 128:
        tc = (tc // 128) * 128          # lane-aligned tile
    else:
        tc = rows                       # fewer than 128 rows: single full block
    kernel = functools.partial(_ln_cols_kernel, eps=eps, inv_denom=inv_denom)
    out2t = pl.pallas_call(
        kernel,
        out_shape=jax.ShapeDtypeStruct((hidden, rows), x.dtype),
        grid_spec=pltpu.PrefetchScalarGridSpec(
            num_scalar_prefetch=0,
            grid=(pl.cdiv(rows, tc),),
            in_specs=[
                pl.BlockSpec((hidden, tc), lambda i: (0, i)),
                pl.BlockSpec((hidden, 2), lambda i: (0, 0)),       # fetched once
            ],
            out_specs=pl.BlockSpec((hidden, tc), lambda i: (0, i)),
        ),
        compiler_params=_compiler_params(),
    )(x2t, wbt)
    return out2t.T.reshape(orig_shape)


def _reference(x, weight, bias, eps):
    hidden = x.shape[-1]
    mu = jnp.mean(x, axis=-1, keepdims=True)
    var = jnp.sum((x - mu) ** 2, axis=-1, keepdims=True) / (hidden - 1)
    sigma = jnp.maximum(jnp.sqrt(var), eps)
    return (x - mu) / sigma * weight + bias


if __name__ == "__main__":
    key = jax.random.PRNGKey(0)
    k1, k2, k3, k4 = jax.random.split(key, 4)

    # Test 1: module config LayerNorm(hidden_size=32), input (batch=2, seq=8, 32)
    # -> exercises the narrow-hidden (lane-dense transposed) path.
    hidden_a = 32
    x_a = jax.random.normal(k1, (2, 8, hidden_a), dtype=jnp.float32)
    w_a = jnp.ones((hidden_a,), dtype=jnp.float32)   # nn.Parameter(torch.ones)
    b_a = jnp.zeros((hidden_a,), dtype=jnp.float32)  # nn.Parameter(torch.zeros)
    out_a = layer_norm(x_a, w_a, b_a, eps=1e-6)
    jax.block_until_ready(out_a)
    ref_a = _reference(x_a, w_a, b_a, 1e-6)
    assert jnp.allclose(out_a, ref_a, atol=1e-2, rtol=1e-2), "mismatch (hidden=32)"

    # Test 2: wide-hidden path with a ragged row count (rows=15 -> cdiv grid,
    # partial last block) and non-trivial affine parameters.
    hidden_b = 256
    x_b = jax.random.normal(k2, (3, 5, hidden_b), dtype=jnp.float32)
    w_b = 1.0 + 0.1 * jax.random.normal(k3, (hidden_b,), dtype=jnp.float32)
    b_b = 0.1 * jax.random.normal(k4, (hidden_b,), dtype=jnp.float32)
    out_b = layer_norm(x_b, w_b, b_b, eps=1e-6)
    jax.block_until_ready(out_b)
    ref_b = _reference(x_b, w_b, b_b, 1e-6)
    assert jnp.allclose(out_b, ref_b, atol=1e-2, rtol=1e-2), "mismatch (hidden=256)"

    print("KERNEL_OK")
</pallas_src>

<mosaic_0001>
module attributes {stable_mosaic.version = 11 : i64} {
  func.func @_ln_cols_kernel(%arg0: i32, %arg1: memref<32x16xf32, #tpu.memory_space<vmem>>, %arg2: memref<32x2xf32, #tpu.memory_space<vmem>>, %arg3: memref<32x16xf32, #tpu.memory_space<vmem>>) attributes {dimension_semantics = [#tpu.dimension_semantics<parallel>], iteration_bounds = array<i64: 1>, scalar_prefetch = 0 : i64, scratch_operands = 0 : i64, tpu.core_type = #tpu.core_type<tc>, window_params = [{transform_indices = @transform_0, window_bounds = array<i64: 32, 16>}, {pipeline_mode = #tpu.pipeline_mode<synchronous>, transform_indices = @transform_1, window_bounds = array<i64: 32, 2>}, {transform_indices = @transform_2, window_bounds = array<i64: 32, 16>}]} {
    %c0 = arith.constant 0 : index
    %c0_0 = arith.constant 0 : index
    %0 = vector.load %arg1[%c0, %c0_0] : memref<32x16xf32, #tpu.memory_space<vmem>>, vector<32x16xf32>
    %c0_1 = arith.constant 0 : index
    %c0_2 = arith.constant 0 : index
    %1 = vector.load %arg2[%c0_1, %c0_2] : memref<32x2xf32, #tpu.memory_space<vmem>>, vector<32x2xf32>
    %cst = arith.constant dense<0.000000e+00> : vector<16xf32>
    %2 = vector.multi_reduction <add>, %0, %cst [0] : vector<32x16xf32> to vector<16xf32>
    %3 = vector.shape_cast %2 : vector<16xf32> to vector<1x16xf32>
    %cst_3 = arith.constant 3.200000e+01 : f32
    %4 = vector.broadcast %cst_3 : f32 to vector<1x16xf32>
    %5 = arith.divf %3, %4 : vector<1x16xf32>
    %6 = vector.broadcast %5 : vector<1x16xf32> to vector<32x16xf32>
    %7 = arith.subf %0, %6 : vector<32x16xf32>
    %8 = arith.mulf %7, %7 : vector<32x16xf32>
    %cst_4 = arith.constant dense<0.000000e+00> : vector<16xf32>
    %9 = vector.multi_reduction <add>, %8, %cst_4 [0] : vector<32x16xf32> to vector<16xf32>
    %10 = vector.shape_cast %9 : vector<16xf32> to vector<1x16xf32>
    %cst_5 = arith.constant 0.0322580636 : f32
    %11 = vector.broadcast %cst_5 : f32 to vector<1x16xf32>
    %12 = arith.mulf %10, %11 : vector<1x16xf32>
    %13 = math.rsqrt %12 : vector<1x16xf32>
    %cst_6 = arith.constant 1.000000e+06 : f32
    %14 = vector.broadcast %cst_6 : f32 to vector<1x16xf32>
    %15 = arith.minimumf %13, %14 : vector<1x16xf32>
    %16 = vector.broadcast %15 : vector<1x16xf32> to vector<32x16xf32>
    %17 = arith.mulf %7, %16 : vector<32x16xf32>
    %18 = vector.extract_strided_slice %1 {offsets = [0, 0], sizes = [32, 1], strides = [1, 1]} : vector<32x2xf32> to vector<32x1xf32>
    %19 = vector.broadcast %18 : vector<32x1xf32> to vector<32x16xf32>
    %20 = arith.mulf %17, %19 : vector<32x16xf32>
    %21 = vector.extract_strided_slice %1 {offsets = [0, 1], sizes = [32, 1], strides = [1, 1]} : vector<32x2xf32> to vector<32x1xf32>
    %22 = vector.broadcast %21 : vector<32x1xf32> to vector<32x16xf32>
    %23 = arith.addf %20, %22 : vector<32x16xf32>
    %c0_7 = arith.constant 0 : index
    %c0_8 = arith.constant 0 : index
    %24 = vector.load %arg3[%c0_7, %c0_8] : memref<32x16xf32, #tpu.memory_space<vmem>>, vector<32x16xf32>
    tpu.vector_store %arg3[%c0_7, %c0_8], %23 {strides = array<i32>} : memref<32x16xf32, #tpu.memory_space<vmem>>, vector<32x16xf32>,
    return
  }
  func.func @transform_0(%arg0: i32) -> (i32, i32) {
    %c0_i32 = arith.constant 0 : i32
    %c0_i32_0 = arith.constant 0 : i32
    return %c0_i32, %arg0 : i32, i32
  }
  func.func @transform_1(%arg0: i32) -> (i32, i32) {
    %c0_i32 = arith.constant 0 : i32
    %c0_i32_0 = arith.constant 0 : i32
    %c0_i32_1 = arith.constant 0 : i32
    return %c0_i32, %c0_i32_0 : i32, i32
  }
  func.func @transform_2(%arg0: i32) -> (i32, i32) {
    %c0_i32 = arith.constant 0 : i32
    %c0_i32_0 = arith.constant 0 : i32
    return %c0_i32, %arg0 : i32, i32
  }
}

</mosaic_0001>

<bundles_post_ra>
// kernel: tpu_custom_call.1
= control target key start
LH: loop header
LB: loop body
LE: loop exit
PB: predicated region body
PF: predicated region fallthrough
CT: control target
= control target key end

     0   :  { %v123_v0 = vmov 0   ;;  %v124_v5 = vmov 1   ;;  %vm19_vm0 = vcmask 130048   ;;  %s188_s1 = inlined_call_operand.vmem [shape: f32[32,2], index: 1, kind: input, shape index: {}]   ;;  %s189_s0 = inlined_call_operand.vmem [shape: f32[32,16], index: 0, kind: input, shape index: {}]   ;;  %s190_s2 = inlined_call_operand.vmem [shape: f32[32,16], index: 2, kind: output, shape index: {}]  }
   0x1   :  { %118 = vset.pattern.permute.xlu1 %v123_v0  ;;  %117 = vset.pattern.permute.xlu0 %v123_v0  ;;  %v17_v1 = vld [vmem:[%s188_s1 + $0x10] sm:$0xff]  ;;  %v15_v2 = vld [vmem:[%s188_s1] sm:$0xff]  ;;  %v18_v3 = vld [vmem:[%s188_s1 + $0x18] sm:$0xff] }
   0x2   :  { %75 = vperm.xlu1 %118, %v17_v1   ;;  %65 = vperm.xlu0 %117, %v15_v2   ;;  %v16_v4 = vld [vmem:[%s188_s1 + $0x8] sm:$0xff]  ;;  %v11_v6 = vld [vmem:[%s189_s0] sm:$0xff]  ;;  %v13_v10 = vld [vmem:[%s189_s0 + $0x10] sm:$0xff] }
   0x3   :  { %v12_v7 = vld [vmem:[%s189_s0 + $0x8] sm:$0xff]  ;;  %v20_v8 = vsel %vm19_vm0, %v11_v6, 0.0  ;;  %v23_v12 = vsel %vm19_vm0, %v13_v10, 0.0  ;;  %v14_v13 = vld [vmem:[%s189_s0 + $0x18] sm:$0xff] }
   0x4   :  { %v21_v9 = vsel %vm19_vm0, %v12_v7, 0.0  ;;  %v25_v15 = vsel %vm19_vm0, %v14_v13, 0.0 }
   0x5   :  { %v22_v11 = vadd.f32 %v21_v9, %v20_v8 }
   0x6   :  { %80 = vperm.xlu1 %118, %v18_v3   ;;  %70 = vperm.xlu0 %117, %v16_v4  }
   0x7   :  { %v24_v14 = vadd.f32 %v23_v12, %v22_v11 }
   0x9   :  { %v26_v16 = vadd.f32 %v25_v15, %v24_v14 }
   0xa   :  { %120 = vset.pattern.permute.xlu1 %v124_v5  ;;  %119 = vset.pattern.permute.xlu0 %v124_v5 }
   0xb   :  { %92 = vperm.xlu1 %120, %v16_v4   ;;  %88 = vperm.xlu0 %119, %v15_v2   ;;  %v27_v17 = vrot.slane %v26_v16, 4 }
   0xd   :  { %v28_v18 = vadd.f32 %v27_v17, %v26_v16 }
   0xf   :  { %96 = vperm.xlu1 %120, %v17_v1   ;;  %100 = vperm.xlu0 %119, %v18_v3   ;;  %v29_v19 = vrot.slane %v28_v18, 2 }
  0x11   :  { %v30_v20 = vadd.f32 %v29_v19, %v28_v18 }
  0x13   :  { %v31_v21 = vrot.slane %v30_v20, 1 }
  0x15   :  { %v32_v22 = vadd.f32 %v31_v21, %v30_v20 }
  0x17   :  { %v34_v23 = vmul.f32 0.03125, %v32_v22 }
  0x19   :  { %v35_v24 = vsub.f32 %v11_v6, %v34_v23  ;;  %v36_v25 = vsub.f32 %v12_v7, %v34_v23  ;;  %v37_v26 = vsub.f32 %v13_v10, %v34_v23  ;;  %v38_v29 = vsub.f32 %v14_v13, %v34_v23 }
  0x1b   :  { %v39_v27 = vmul.f32 %v35_v24, %v35_v24  ;;  %v40_v28 = vmul.f32 %v36_v25, %v36_v25  ;;  %v41_v30 = vmul.f32 %v37_v26, %v37_v26  ;;  %v42_v34 = vmul.f32 %v38_v29, %v38_v29 }
  0x1d   :  { %v43_v31 = vsel %vm19_vm0, %v39_v27, 0.0  ;;  %v44_v32 = vsel %vm19_vm0, %v40_v28, 0.0  ;;  %v46_v35 = vsel %vm19_vm0, %v41_v30, 0.0  ;;  %v48_v37 = vsel %vm19_vm0, %v42_v34, 0.0 }
  0x1e   :  { %v45_v33 = vadd.f32 %v44_v32, %v43_v31 }
  0x20   :  { %v47_v36 = vadd.f32 %v46_v35, %v45_v33 }
  0x22   :  { %v49_v38 = vadd.f32 %v48_v37, %v47_v36 }
  0x24   :  { %v50_v39 = vrot.slane %v49_v38, 4 }
  0x26   :  { %v51_v40 = vadd.f32 %v50_v39, %v49_v38 }
  0x28   :  { %v52_v41 = vrot.slane %v51_v40, 2 }
  0x2a   :  { %v53_v42 = vadd.f32 %v52_v41, %v51_v40 }
  0x2c   :  { %v54_v43 = vrot.slane %v53_v42, 1 }
  0x2e   :  { %v55_v44 = vadd.f32 %v54_v43, %v53_v42 }
  0x30   :  { %v56_v45 = vmul.f32 0.032258064, %v55_v44 }
  0x32   :  { %121 = vrsqrt.f32 %v56_v45 }
  0x3c   :  { %v122_v46 = vpop.eup %121 }
  0x3d   :  { %v58_v48 = vmin.f32 %v122_v46, 1000000.0 }
  0x3f   :  { %v59_v50 = vmul.f32 %v58_v48, %v35_v24  ;;  %v60_v53 = vmul.f32 %v58_v48, %v36_v25  ;;  %v61_v54 = vmul.f32 %v58_v48, %v37_v26  ;;  %v62_v56 = vmul.f32 %v58_v48, %v38_v29 }
  0x81   :  { %v76_v47 = vpop.permute.xlu1 %75  ;;  %v66_v49 = vpop.permute.xlu0 %65 }
  0x82   :  { %v83_v55 = vmul.f32 %v66_v49, %v59_v50  ;;  %v85_v62 = vmul.f32 %v76_v47, %v61_v54 }
  0x85   :  { %v81_v51 = vpop.permute.xlu1 %80  ;;  %v71_v52 = vpop.permute.xlu0 %70 }
  0x86   :  { %v84_v57 = vmul.f32 %v71_v52, %v60_v53  ;;  %v86_v63 = vmul.f32 %v81_v51, %v62_v56 }
  0x8a   :  { %v93_v58 = vpop.permute.xlu1 %92  ;;  %v89_v59 = vpop.permute.xlu0 %88 }
  0x8b   :  { %v104_v60 = vadd.f32 %v93_v58, %v84_v57  ;;  %v103_v61 = vadd.f32 %v89_v59, %v83_v55 }
  0x8d   :  { %108 = vst.msk [vmem:[%s190_s2 + $0x8] sm:$0xff] %vm19_vm0, %v104_v60  ;;  %107 = vst.msk [vmem:[%s190_s2] sm:$0xff] %vm19_vm0, %v103_v61 }
  0x8e   :  { %v97_v0 = vpop.permute.xlu1 %96  ;;  %v101_v1 = vpop.permute.xlu0 %100 }
  0x8f   :  { %v105_v2 = vadd.f32 %v97_v0, %v85_v62  ;;  %v106_v3 = vadd.f32 %v101_v1, %v86_v63 }
  0x91   :  { %109 = vst.msk [vmem:[%s190_s2 + $0x10] sm:$0xff] %vm19_vm0, %v105_v2  ;;  %110 = vst.msk [vmem:[%s190_s2 + $0x18] sm:$0xff] %vm19_vm0, %v106_v3 }

</bundles_post_ra>
